<compile_context>
chip_gen: v5e
topology: v5e:2x2
jax: 0.10.0
libtpu: 0.0.40
codegen_flags: <defaults>
</compile_context>

<pallas_src>
import functools
import math

import jax
import jax.numpy as jnp
from jax.experimental import pallas as pl
from jax.experimental.pallas import tpu as pltpu


def _layer_norm_kernel(alpha_ref, bias_ref, x_ref, o_ref, *, epsilon, hidden):
    """Normalize each row of one (tile_rows, hidden) tile over the last axis."""
    x = x_ref[...].astype(jnp.float32)

    mean = jnp.sum(x, axis=-1, keepdims=True) * (1.0 / hidden)
    centered = x - mean

    # torch.Tensor.std defaults to the unbiased estimator (ddof=1).
    denom = max(hidden - 1, 1)  # guard hidden == 1 (torch would give NaN)
    var = jnp.sum(centered * centered, axis=-1, keepdims=True) * (1.0 / denom)
    s = jnp.sqrt(var) + epsilon

    # Per-row reciprocal on the EUP (only a (tile_rows, 1) column) plus one
    # Newton-Raphson step for full f32 accuracy; per-element work is then a
    # single mul+add on the VPU instead of a divide.
    inv = pl.reciprocal(s, approx=True)
    inv = inv * (2.0 - s * inv)

    scale = alpha_ref[0] * inv  # (tile_rows, 1)
    o_ref[...] = (centered * scale + bias_ref[0]).astype(o_ref.dtype)


def _vmem_budget_and_limit():
    """Generation-aware VMEM numbers (v5e/v6e: 128 MiB, v7x: 64 MiB per TC)."""
    cap = 128 * 1024 * 1024
    try:
        info = pltpu.get_tpu_info()
        cap = int(getattr(info, "vmem_capacity_bytes", cap)) or cap
    except Exception:
        pass
    budget = cap // 2          # what the tile sizing is allowed to consume
    limit = int(cap * 0.7)     # scoped VMEM limit handed to the compiler
    return budget, limit


def _choose_tile_rows(rows, hidden, itemsize, vmem_budget_bytes):
    """Largest row tile keeping double-buffered I/O + f32 temporaries in budget."""
    hidden_layout = ((hidden + 127) // 128) * 128  # lane padding in VMEM layout
    # 2x double-buffered input + 2x double-buffered output + ~3 full-tile f32
    # temporaries (x_f32, centered, squared) live inside the kernel body.
    per_row_bytes = hidden_layout * (2 * itemsize + 2 * itemsize + 3 * 4)

    # Sublane packing: 8 rows/sublane-group for 4-byte dtypes, 16 for 2-byte, 32 for 1-byte.
    sublane = 8 if itemsize >= 4 else (16 if itemsize == 2 else 32)

    tile = max(vmem_budget_bytes // per_row_bytes, sublane)
    tile = max((tile // sublane) * sublane, sublane)
    tile = min(tile, 2048)  # diminishing returns beyond ~2K rows per step

    if tile >= rows:
        if rows > sublane:
            # Split a would-be single-step grid into >= 2 steps so both v7x
            # TensorCores get work (harmless on single-TC v5e/v6e).
            half = -(-rows // 2)
            tile = max(((half + sublane - 1) // sublane) * sublane, sublane)
        else:
            tile = rows  # full-array block: any row count is allowed
    return tile


def layer_normalization(x, alpha, bias, *, epsilon=1e-6, tile_rows=None):
    """x: (..., hidden). alpha, bias: shape-(1,) scalar parameters."""
    orig_shape = x.shape
    hidden = orig_shape[-1]
    rows = math.prod(orig_shape[:-1]) if len(orig_shape) > 1 else 1
    x2d = x.reshape(rows, hidden)

    alpha = jnp.asarray(alpha, jnp.float32).reshape(1)
    bias = jnp.asarray(bias, jnp.float32).reshape(1)

    itemsize = jnp.dtype(x.dtype).itemsize
    vmem_budget, vmem_limit = _vmem_budget_and_limit()

    if tile_rows is None:
        tile_rows = _choose_tile_rows(rows, hidden, itemsize, vmem_budget)
    num_tiles = int(pl.cdiv(rows, tile_rows))

    kernel = functools.partial(_layer_norm_kernel, epsilon=epsilon, hidden=hidden)

    out2d = pl.pallas_call(
        kernel,
        out_shape=jax.ShapeDtypeStruct((rows, hidden), x.dtype),
        grid=(num_tiles,),
        in_specs=[
            pl.BlockSpec(memory_space=pltpu.MemorySpace.SMEM),  # alpha
            pl.BlockSpec(memory_space=pltpu.MemorySpace.SMEM),  # bias
            pl.BlockSpec((tile_rows, hidden), lambda i: (i, 0)),
        ],
        out_specs=pl.BlockSpec((tile_rows, hidden), lambda i: (i, 0)),
        compiler_params=pltpu.CompilerParams(
            dimension_semantics=("parallel",),
            vmem_limit_bytes=vmem_limit,
        ),
    )(alpha, bias, x2d)

    return out2d.reshape(orig_shape)


def _reference(x, alpha, bias, epsilon):
    mean = jnp.mean(x, axis=-1, keepdims=True)
    std = jnp.std(x, axis=-1, keepdims=True, ddof=1)
    return alpha[0] * (x - mean) / (std + epsilon) + bias[0]


if __name__ == "__main__":
    key = jax.random.PRNGKey(0)

    # Parameters matching nn.Parameter(torch.ones(1)) / nn.Parameter(torch.zeros(1)).
    alpha = jnp.ones((1,), dtype=jnp.float32)
    bias = jnp.zeros((1,), dtype=jnp.float32)

    # Shape consistent with the transformer module: (batch, seq, hidden).
    batch, seq, hidden = 2, 8, 32
    x = jax.random.normal(key, (batch, seq, hidden), dtype=jnp.float32)
    out = layer_normalization(x, alpha, bias, epsilon=1e-6)
    jax.block_until_ready(out)
    ref = _reference(x, alpha, bias, 1e-6)
    assert jnp.allclose(out, ref, atol=1e-4, rtol=1e-4), "aligned-shape mismatch"

    # Ragged shape exercising the partial last row block and non-128 hidden.
    x2 = jax.random.normal(jax.random.PRNGKey(1), (3, 5, 200), dtype=jnp.float32)
    out2 = layer_normalization(x2, alpha, bias, epsilon=1e-6)
    jax.block_until_ready(out2)
    ref2 = _reference(x2, alpha, bias, 1e-6)
    assert jnp.allclose(out2, ref2, atol=1e-4, rtol=1e-4), "ragged-shape mismatch"

    print("KERNEL_OK")
</pallas_src>

<mosaic_0001>
module attributes {stable_mosaic.version = 11 : i64} {
  func.func @_layer_norm_kernel(%arg0: i32, %arg1: memref<1xf32, #tpu.memory_space<smem>>, %arg2: memref<1xf32, #tpu.memory_space<smem>>, %arg3: memref<8x32xf32, #tpu.memory_space<vmem>>, %arg4: memref<8x32xf32, #tpu.memory_space<vmem>>) attributes {dimension_semantics = [#tpu.dimension_semantics<parallel>], iteration_bounds = array<i64: 2>, scalar_prefetch = 0 : i64, scratch_operands = 0 : i64, tpu.core_type = #tpu.core_type<tc>, window_params = [{transform_indices = @transform_0, window_bounds = array<i64: 1>}, {transform_indices = @transform_1, window_bounds = array<i64: 1>}, {transform_indices = @transform_2, window_bounds = array<i64: 8, 32>}, {transform_indices = @transform_3, window_bounds = array<i64: 8, 32>}]} {
    %c0 = arith.constant 0 : index
    %c0_0 = arith.constant 0 : index
    %0 = vector.load %arg3[%c0, %c0_0] : memref<8x32xf32, #tpu.memory_space<vmem>>, vector<8x32xf32>
    %cst = arith.constant dense<0.000000e+00> : vector<8xf32>
    %1 = vector.multi_reduction <add>, %0, %cst [1] : vector<8x32xf32> to vector<8xf32>
    %2 = vector.shape_cast %1 : vector<8xf32> to vector<8x1xf32>
    %cst_1 = arith.constant 3.125000e-02 : f32
    %3 = vector.broadcast %cst_1 : f32 to vector<8x1xf32>
    %4 = arith.mulf %2, %3 : vector<8x1xf32>
    %5 = vector.broadcast %4 : vector<8x1xf32> to vector<8x32xf32>
    %6 = arith.subf %0, %5 : vector<8x32xf32>
    %7 = arith.mulf %6, %6 : vector<8x32xf32>
    %cst_2 = arith.constant dense<0.000000e+00> : vector<8xf32>
    %8 = vector.multi_reduction <add>, %7, %cst_2 [1] : vector<8x32xf32> to vector<8xf32>
    %9 = vector.shape_cast %8 : vector<8xf32> to vector<8x1xf32>
    %cst_3 = arith.constant 0.0322580636 : f32
    %10 = vector.broadcast %cst_3 : f32 to vector<8x1xf32>
    %11 = arith.mulf %9, %10 : vector<8x1xf32>
    %12 = math.sqrt %11 : vector<8x1xf32>
    %cst_4 = arith.constant 9.99999997E-7 : f32
    %13 = vector.broadcast %cst_4 : f32 to vector<8x1xf32>
    %14 = arith.addf %12, %13 : vector<8x1xf32>
    %15 = tpu.reciprocal %14 {approx = true} : vector<8x1xf32> -> vector<8x1xf32>
    %16 = arith.mulf %14, %15 : vector<8x1xf32>
    %cst_5 = arith.constant 2.000000e+00 : f32
    %17 = vector.broadcast %cst_5 : f32 to vector<8x1xf32>
    %18 = arith.subf %17, %16 : vector<8x1xf32>
    %19 = arith.mulf %15, %18 : vector<8x1xf32>
    %c0_6 = arith.constant 0 : index
    %20 = memref.load %arg1[%c0_6] : memref<1xf32, #tpu.memory_space<smem>>
    %21 = vector.broadcast %20 : f32 to vector<8x1xf32>
    %22 = arith.mulf %21, %19 : vector<8x1xf32>
    %23 = vector.broadcast %22 : vector<8x1xf32> to vector<8x32xf32>
    %24 = arith.mulf %6, %23 : vector<8x32xf32>
    %c0_7 = arith.constant 0 : index
    %25 = memref.load %arg2[%c0_7] : memref<1xf32, #tpu.memory_space<smem>>
    %26 = vector.broadcast %25 : f32 to vector<8x32xf32>
    %27 = arith.addf %24, %26 : vector<8x32xf32>
    %c0_8 = arith.constant 0 : index
    %c0_9 = arith.constant 0 : index
    %28 = vector.load %arg4[%c0_8, %c0_9] : memref<8x32xf32, #tpu.memory_space<vmem>>, vector<8x32xf32>
    tpu.vector_store %arg4[%c0_8, %c0_9], %27 {strides = array<i32>} : memref<8x32xf32, #tpu.memory_space<vmem>>, vector<8x32xf32>,
    return
  }
  func.func @transform_0(%arg0: i32) -> i32 {
    %c0_i32 = arith.constant 0 : i32
    %c0_i32_0 = arith.constant 0 : i32
    return %c0_i32 : i32
  }
  func.func @transform_1(%arg0: i32) -> i32 {
    %c0_i32 = arith.constant 0 : i32
    %c0_i32_0 = arith.constant 0 : i32
    return %c0_i32 : i32
  }
  func.func @transform_2(%arg0: i32) -> (i32, i32) {
    %c0_i32 = arith.constant 0 : i32
    %c0_i32_0 = arith.constant 0 : i32
    return %arg0, %c0_i32 : i32, i32
  }
  func.func @transform_3(%arg0: i32) -> (i32, i32) {
    %c0_i32 = arith.constant 0 : i32
    %c0_i32_0 = arith.constant 0 : i32
    return %arg0, %c0_i32 : i32, i32
  }
}

</mosaic_0001>

<bundles_post_ra>
// kernel: tpu_custom_call.1
= control target key start
LH: loop header
LB: loop body
LE: loop exit
PB: predicated region body
PF: predicated region fallthrough
CT: control target
= control target key end

     0   :  { %s633_s0 = inlined_call_operand.<no memory space> [shape: f32[1], index: 0, kind: input, shape index: {}]   ;;  %s634_s1 = inlined_call_operand.<no memory space> [shape: f32[1], index: 1, kind: input, shape index: {}]   ;;  %s635_s2 = inlined_call_operand.hbm [shape: f32[16,32], index: 2, kind: input, shape index: {}]   ;;  %s636_s3 = inlined_call_operand.hbm [shape: f32[16,32], index: 3, kind: output, shape index: {}]  }
   0x1   :  { %8 = sst [smem:[#allocation2]] %s633_s0 }
   0x2   :  { %9 = sst [smem:[#allocation3]] %s634_s1 }
   0x3   :  { %10 = vsyncpa [#allocation5], 0 }
   0x4   :  { %12 = vsyncpa [#allocation5 + $0x1], 0 }
   0x5   :  { %13 = vsyncpa [#allocation6], 0 }
   0x6   :  { %15 = vsyncpa [#allocation6 + $0x1], 0  ;;  %s499_s16 = smov 0   ;;  %s501_s17 = smov 0  }
   0x7   :  { %s503_s18 = smov 0   ;;  %s505_s19 = smov 0  }
   0x8 LB: > { %s520_s0 = sadd.s32 4294967295, %s471_s19   ;;  %s313_s1 = sadd.s32 4294967294, %s471_s19   ;;  %s471_s19 = sphi %s505_s19, %s646_s19   ;;  %s467_s18 = sphi %s503_s18, %s645_s18   ;;  %s463_s17 = sphi %s501_s17, %s644_s17   ;;  %s459_s16 = sphi %s499_s16, %s643_s16  }
   0x9   : > { %s524_s20 = sadd.s32 1, %s471_s19   ;;  %s70_s21 = sadd.s32 1, %s467_s18 }
   0xa   : > { %s67_s22 = ssub.s32 %s471_s19, %s524_s20  ;;  %p77_p0 = scmp.ne.s32.totalorder %s467_s18, %s463_s17 }
   0xb   : > { %p68_p1 = scmp.eq.s32.totalorder %s67_s22, 0  ;;  %p78_p2 = scmp.eq.s32.totalorder %s471_s19, 0 }
   0xc   : > { %p83_p3 = scmp.ne.s32.totalorder %s463_s17, %s459_s16  ;;  %p84_p4 = scmp.eq.s32.totalorder %s520_s0, 0 }
   0xd   : > { %s536_s23 = scalar_select %p68_p1, %s467_s18, %s70_s21  }
   0xe   : > { %p538_p5 = por %p78_p2, %p77_p0  ;;  %p542_p6 = por %p84_p4, %p83_p3 }
   0xf   : > { %p107_p7 = scmp.eq.s32.totalorder %s520_s0, 1  ;;  %p113_p8 = scmp.eq.s32.totalorder %s313_s1, 1 }
  0x10   : > { %p337_p10 = scmp.lt.s32.totalorder %s471_s19, 2  ;;  %s139_s28 = sand.u32 1, %s467_s18  }
  0x11   : > { %p549_p11 = por %p107_p7, %p77_p0  ;;  %p553_p12 = por %p113_p8, %p83_p3 }
  0x12   : > { %s317_s29 = sshll.u32 %s471_s19, 3  ;;  %s316_s30 = sshll.u32 %s139_s28, 3 }
  0x13   : > { %s147_s6 = scalar_lea.hbm %s635_s2, %s317_s29  ;;  %s143_s8 = scalar_lea.vmem [#allocation4], %s316_s30 }
  0x14   : > { %s149_s7 = sshll.u32 %s147_s6, 4  ;;  %s151_s9 = sshll.u32 %s143_s8, 4  ;;  %s150_s7 = int_to_ptr.hbm [resolvable:$true] %s149_s7  ;;  %s152_s9 = int_to_ptr.vmem [resolvable:$true] %s151_s9 }
  0x15   : > { %p564_p13 = pnand %p337_p10, %p538_p5  ;;  %p318_p0 = scmp.ge.s32.totalorder %s471_s19, 1 }
  0x16   : > { %p156_p1 = scmp.lt.s32.totalorder %s471_s19, 3  ;;  %s140_s11 = scalar_lea.sflag [#allocation5], %s139_s28 }
  0x17   : > { %s375_s12 = sshra.s32 %s150_s7, 4  ;;  %p379_p3 = pneg %p564_p13  ;;  %s376_s12 = int_to_ptr.hbm [resolvable:$true] %s375_s12 }
  0x18   : > { %s377_s13 = scalar_lea.hbm %s376_s12, 8  ;;  %s382_s1 = scalar_lea.hbm %s635_s2, 16 }
  0x19   : > { %p378_p2 = scmp.ne.s32.totalorder %s376_s12, %s377_s13  ;;  %p383_p5 = scmp.lt.s32.totalorder %s376_s12, %s635_s2 }
  0x1a   : > { %p384_p8 = scmp.lt.s32.totalorder %s382_s1, %s377_s13 }
  0x1b   : > { %p380_p4 = pnand %p379_p3, %p378_p2 }
  0x1c   : > { %p385_p10 = por %p384_p8, %p383_p5 }
  0x1d   : > { %p381_p7 = pneg %p380_p4 }
  0x1f   : > { %p386_p9 = pnand %p385_p10, %p381_p7 }
  0x21   : > { %389 = shalt.err (!%p386_p9)
}
  0x22   : > { %332 = dma.hbm_to_vmem [thread:$0]  (!%p564_p13), %s150_s7, 128, %s152_s9, %s140_s11  }
  0x23   : > { %p157_p2 = pnand %p318_p0, %p156_p1 }
  0x24   : > { %s585_s24 = sand.u32 (!%p157_p2), 1, %s463_s17  }
  0x25   : > { %160 = sbr.rel (%p157_p2) target bundleno = 331 (0x14b), region = 32  ;;  %s319_s28 = sshll.u32 (!%p157_p2), %s585_s24, 3 }
  0x26   : > { %s163_s29 = scalar_lea.sflag (!%p157_p2), [#allocation5], %s585_s24  ;;  %s166_s30 = scalar_lea.vmem (!%p157_p2), [#allocation4], %s319_s28 }
  0x2a   : > { %450 = dma.done.wait (%p542_p6), %s163_s29, 128  }
  0x2b   : > { %452 = vsyncadd (%p542_p6), %s163_s29, 4294967168  ;;  %vm191_vm0 = vcmask 261120   ;;  %v190_v0 = vld [vmem:[%s166_s30] sm:$0xff]  ;;  %s219_s25 = sld [smem:[#allocation2]]  ;;  %s322_s5 = sshll.u32 %s520_s0, 3 }
  0x2c   : > { %v192_v1 = vsel %vm191_vm0, %v190_v0, 0.0  ;;  %s223_s4 = sld [smem:[#allocation3]]  ;;  %s238_s8 = scalar_lea.hbm %s636_s3, %s322_s5 }
  0x2d   : > { %193 = vadd.xlane.f32.xlu0 %v192_v1  ;;  %s189_s9 = scalar_lea.vmem [#allocation7], %s319_s28  ;;  %s242_s11 = sshll.u32 %s238_s8, 4  ;;  %s243_s11 = int_to_ptr.hbm [resolvable:$true] %s242_s11 }
  0x2e   : > { %s240_s10 = sshll.u32 %s189_s9, 4  ;;  %s228_s0 = scalar_lea.sflag [#allocation6], %s585_s24  ;;  %s241_s10 = int_to_ptr.vmem [resolvable:$true] %s240_s10 }
  0x2f   : > { %s419_s12 = sshra.s32 %s243_s11, 4  ;;  %s425_s1 = scalar_lea.hbm %s636_s3, 16  ;;  %s420_s12 = int_to_ptr.hbm [resolvable:$true] %s419_s12 }
  0x30   : > { %s421_s13 = scalar_lea.hbm %s420_s12, 8  ;;  %p426_p0 = scmp.lt.s32.totalorder %s420_s12, %s636_s3 }
  0x31   : > { %v220_v23 = vstv %s219_s25  ;;  %p422_p6 = scmp.ne.s32.totalorder %s420_s12, %s421_s13  ;;  %p427_p1 = scmp.lt.s32.totalorder %s425_s1, %s421_s13 }
  0x32   : > { %v224_v26 = vstv %s223_s4 }
  0x33   : > { %p423_p9 = pnand %p422_p6, %p549_p11  ;;  %p428_p3 = por %p427_p1, %p426_p0 }
  0x35   : > { %p424_p13 = pneg %p423_p9 }
  0x37   : > { %p429_p4 = pnand %p428_p3, %p424_p13 }
  0xa0   : > { %v194_v2 = vpop.xlane.xlu0 %193 }
  0xa1   : > { %v195_v3 = vmul.f32 0.03125, %v194_v2 }
  0xa3   : > { %v196_v4 = vsub.f32 %v190_v0, %v195_v3 }
  0xa5   : > { %v197_v5 = vmul.f32 %v196_v4, %v196_v4 }
  0xa7   : > { %v198_v6 = vsel %vm191_vm0, %v197_v5, 0.0 }
  0xa8   : > { %199 = vadd.xlane.f32.xlu0 %v198_v6 }
 0x11b   : > { %v200_v7 = vpop.xlane.xlu0 %199 }
 0x11c   : > { %v201_v8 = vmul.f32 0.032258064, %v200_v7 }
 0x11e   : > { %371 = vrsqrt.f32 %v201_v8  ;;  %vm209_vm1 = vcmp.eq.f32.partialorder %v201_v8, inf  ;;  %v212_v16 = vand.u32 2147483648, %v201_v8  ;;  %vm211_vm2 = vcmp.eq.f32.partialorder %v201_v8, 0.0 }
 0x124   : > { %v372_v9 = vpop.eup %371 }
 0x125   : > { %v203_v10 = vmul.f32 %v372_v9, %v201_v8 }
 0x127   : > { %v204_v11 = vmul.f32 %v372_v9, %v203_v10 }
 0x129   : > { %v205_v12 = vmul.f32 0.5, %v204_v11 }
 0x12b   : > { %v206_v13 = vsub.f32 1.5, %v205_v12 }
 0x12d   : > { %v207_v14 = vmul.f32 %v372_v9, %v206_v13 }
 0x12f   : > { %v208_v15 = vmul.f32 %v207_v14, %v201_v8 }
 0x131   : > { %v210_v17 = vsel %vm209_vm1, %v201_v8, %v208_v15 }
 0x132   : > { %v213_v18 = vsel %vm211_vm2, %v212_v16, %v210_v17 }
 0x133   : > { %v214_v19 = vadd.f32 1e-06, %v213_v18 }
 0x135   : > { %373 = vrcp.f32 %v214_v19 }
 0x13b   : > { %v374_v20 = vpop.eup %373 }
 0x13c   : > { %v216_v21 = vmul.f32 %v374_v20, %v214_v19 }
 0x13e   : > { %v217_v22 = vsub.f32 2.0, %v216_v21 }
 0x140   : > { %v218_v24 = vmul.f32 %v374_v20, %v217_v22 }
 0x142   : > { %v221_v25 = vmul.f32 %v220_v23, %v218_v24 }
 0x144   : > { %v222_v27 = vmul.f32 %v221_v25, %v196_v4 }
 0x146   : > { %v225_v28 = vadd.f32 %v224_v26, %v222_v27 }
 0x148   : > { %226 = vst.msk [vmem:[%s189_s9] sm:$0xff] %vm191_vm0, %v225_v28 }
 0x149   : > { %432 = shalt.err (!%p429_p4)
}
 0x14a   : > { %327 = dma.vmem_to_hbm [thread:$0]  (%p549_p11), %s241_s10, 128, %s243_s11, %s228_s0  }
 0x14b PF: > { %s254_s24 = sand.u32 1, %s459_s16   ;;  %p642_p7 = scmp.ge.s32.totalorder %s471_s19, 2 }
 0x14c   : > { %s255_s28 = scalar_lea.sflag [#allocation6], %s254_s24 }
 0x14d   : > { %p334_p5 = pnand %p642_p7, %p553_p12 }
 0x14f   : > { %p335_p8 = pneg %p334_p5 }
 0x151   : > { %454 = dma.done.wait (%p335_p8), %s255_s28, 128  }
 0x152   : > { %456 = vsyncadd (%p335_p8), %s255_s28, 4294967168  ;;  %p18_p10 = scmp.ge.s32.totalorder %s524_s20, 4   ;;  %s643_s16 = smov %s463_s17 }
 0x153   : > { %s644_s17 = smov %s467_s18  ;;  %s645_s18 = smov %s536_s23 }
 0x154   : > { %s646_s19 = smov %s524_s20  ;;  %20 = sbr.rel (!%p18_p10) target bundleno = 8 (0x8), region = 77 }
 0x159   :  { %261 = vsyncpa [#allocation5], 1 }
 0x15a   :  { %263 = vsyncpa [#allocation5 + $0x1], 1 }
 0x15b   :  { %264 = vsyncpa [#allocation6], 1 }
 0x15c   :  { %266 = vsyncpa [#allocation6 + $0x1], 1 }

</bundles_post_ra>
